<compile_context>
chip_gen: v7x
topology: tpu7x:2x2x1
jax: 0.10.0
libtpu: 0.0.40
codegen_flags: <defaults>
</compile_context>

<pallas_src>
import functools
import math

import jax
import jax.numpy as jnp
from jax.experimental import pallas as pl
from jax.experimental.pallas import tpu as pltpu

# ---------------------------------------------------------------------------
# Scaled-down torchaudio.models.emformer_rnnt_base configuration
# (real values in comments)
# ---------------------------------------------------------------------------
VOCAB = 16            # target_vocab_size           (real: user supplied, e.g. 4097)
BLANK = 0             # target_blank_id
N_MELS = 16           # input_dim                   (real: 80)
TR_DIM = 32           # time_reduction_input_dim    (real: 128)
STRIDE = 4            # time_reduction_stride
D_MODEL = TR_DIM * STRIDE     # transformer dim     (real: 512)
N_HEADS = 4           # transformer_num_heads       (real: 8)
HEAD_DIM = D_MODEL // N_HEADS
FFN_DIM = 256         # transformer_ffn_dim         (real: 2048)
N_LAYERS = 2          # transformer_num_layers      (real: 20)
RC_RED = 1            # right_context_length // stride (real: 4 // 4 = 1)
ENC_DIM = 128         # encoding_dim                (real: 1024)
SYM_DIM = 64          # symbol_embedding_dim        (real: 512)
N_LSTM = 2            # num_lstm_layers             (real: 3)
LN_EPS = 1e-5
LSTM_LN_EPS = 1e-3    # lstm_layer_norm_epsilon

MXU_DTYPE = jnp.bfloat16   # MXU operand dtype (accumulation stays f32)
NEG_INF = -1e9
VMEM_LIMIT = 32 * 1024 * 1024   # safe scoped-VMEM limit on v5e/v6e/v7x

VMEM_SPEC = pl.BlockSpec(memory_space=pltpu.MemorySpace.VMEM)


# ---------------------------------------------------------------------------
# Small in-kernel helpers (pure JAX, traced inside the kernels)
# ---------------------------------------------------------------------------
def _ln(x, g, b, eps):
    mu = jnp.mean(x, axis=-1, keepdims=True)
    var = jnp.mean(jnp.square(x - mu), axis=-1, keepdims=True)
    return (x - mu) * jax.lax.rsqrt(var + eps) * g + b


def _mm(a, w):
    # bf16 MXU operands, f32 accumulation (weights are already bf16 at the call boundary).
    return jnp.dot(a.astype(MXU_DTYPE), w.astype(MXU_DTYPE),
                   preferred_element_type=jnp.float32)


def _logaddexp(a, b):
    m = jnp.maximum(a, b)
    return m + jnp.log(jnp.exp(a - m) + jnp.exp(b - m))


# ---------------------------------------------------------------------------
# Generic batched linear / linear+LN / layernorm kernels  (grid over batch)
# ---------------------------------------------------------------------------
def _batched_linear_kernel(x_ref, w_ref, b_ref, o_ref):
    y = _mm(x_ref[0], w_ref[...]) + b_ref[...]
    o_ref[0] = y.astype(o_ref.dtype)


def batched_linear(x, w, b=None, out_dtype=jnp.float32):
    B, T, K = x.shape
    N = w.shape[1]
    b2 = (jnp.zeros((N,), jnp.float32) if b is None else b).reshape(1, N)
    return pl.pallas_call(
        _batched_linear_kernel,
        out_shape=jax.ShapeDtypeStruct((B, T, N), out_dtype),
        grid=(B,),
        in_specs=[
            pl.BlockSpec((1, T, K), lambda bb: (bb, 0, 0)),
            pl.BlockSpec((K, N), lambda bb: (0, 0)),
            pl.BlockSpec((1, N), lambda bb: (0, 0)),
        ],
        out_specs=pl.BlockSpec((1, T, N), lambda bb: (bb, 0, 0)),
        compiler_params=pltpu.CompilerParams(dimension_semantics=("parallel",)),
    )(x, w.astype(MXU_DTYPE), b2)


def _batched_linear_ln_kernel(x_ref, w_ref, b_ref, g_ref, beta_ref, o_ref):
    y = _mm(x_ref[0], w_ref[...]) + b_ref[...]
    o_ref[0] = _ln(y, g_ref[...], beta_ref[...], LN_EPS).astype(o_ref.dtype)


def batched_linear_ln(x, w, b, g, beta):
    # Fused linear + LayerNorm (encoder output_linear+LN, predictor linear+LN).
    B, T, K = x.shape
    N = w.shape[1]
    return pl.pallas_call(
        _batched_linear_ln_kernel,
        out_shape=jax.ShapeDtypeStruct((B, T, N), jnp.float32),
        grid=(B,),
        in_specs=[
            pl.BlockSpec((1, T, K), lambda bb: (bb, 0, 0)),
            pl.BlockSpec((K, N), lambda bb: (0, 0)),
            pl.BlockSpec((1, N), lambda bb: (0, 0)),
            pl.BlockSpec((1, N), lambda bb: (0, 0)),
            pl.BlockSpec((1, N), lambda bb: (0, 0)),
        ],
        out_specs=pl.BlockSpec((1, T, N), lambda bb: (bb, 0, 0)),
        compiler_params=pltpu.CompilerParams(dimension_semantics=("parallel",)),
    )(x, w.astype(MXU_DTYPE), b.reshape(1, N), g.reshape(1, N), beta.reshape(1, N))


def _batched_layernorm_kernel(x_ref, g_ref, b_ref, o_ref):
    o_ref[0] = _ln(x_ref[0].astype(jnp.float32), g_ref[...], b_ref[...], LN_EPS)


def batched_layernorm(x, g, b):
    B, T, D = x.shape
    return pl.pallas_call(
        _batched_layernorm_kernel,
        out_shape=jax.ShapeDtypeStruct((B, T, D), jnp.float32),
        grid=(B,),
        in_specs=[
            pl.BlockSpec((1, T, D), lambda bb: (bb, 0, 0)),
            pl.BlockSpec((1, D), lambda bb: (0, 0)),
            pl.BlockSpec((1, D), lambda bb: (0, 0)),
        ],
        out_specs=pl.BlockSpec((1, T, D), lambda bb: (bb, 0, 0)),
        compiler_params=pltpu.CompilerParams(dimension_semantics=("parallel",)),
    )(x, g.reshape(1, D), b.reshape(1, D))


# ---------------------------------------------------------------------------
# Fused transformer (Emformer-style) layer: LN -> QKV -> masked MHA -> out-proj
# -> residual -> LN -> FFN(GELU) -> residual -> LN.  grid=(B,), lengths via
# scalar prefetch, key mask built in-kernel (no HBM bias tensor).
# Attention uses heads-batched einsums (2 MXU calls) instead of a per-head loop.
# ---------------------------------------------------------------------------
def _encoder_layer_kernel(len_ref, x_ref,
                          ln_in_g, ln_in_b, wq, bq, wkv, bkv, wo, bo,
                          ff_ln_g, ff_ln_b, w1, b1, w2, b2,
                          ln_out_g, ln_out_b, o_ref):
    b = pl.program_id(0)
    T = x_ref.shape[1]
    x = x_ref[0].astype(jnp.float32)                          # (T, D) f32 (activations bf16 in HBM)
    valid_len = len_ref[b]

    # --- self-attention block ------------------------------------------------
    xn = _ln(x, ln_in_g[...], ln_in_b[...], LN_EPS)
    q = _mm(xn, wq[...]) + bq[...]
    kv = _mm(xn, wkv[...]) + bkv[...]
    k = kv[:, :D_MODEL]
    v = kv[:, D_MODEL:]

    def split_heads(m):                                       # (T, D) -> (H, T, HEAD_DIM)
        return jnp.stack(
            [m[:, h * HEAD_DIM:(h + 1) * HEAD_DIM] for h in range(N_HEADS)], axis=0)

    qh = split_heads(q).astype(MXU_DTYPE)
    kh = split_heads(k).astype(MXU_DTYPE)
    vh = split_heads(v).astype(MXU_DTYPE)

    # key padding mask built in-kernel from the per-batch length.
    key_valid = jax.lax.broadcasted_iota(jnp.int32, (T, T), 1) < valid_len
    scale = 1.0 / math.sqrt(HEAD_DIM)

    # TODO(synk): HEAD_DIM under-fills the MXU contraction depth; at real sizes pad/pack
    # head_dim to >=128 (v5e) / 256 (v6e, v7x) before the scores matmul.
    s = jnp.einsum('hqd,hkd->hqk', qh, kh,
                   preferred_element_type=jnp.float32) * scale            # (H, T, T)
    s = jnp.where(key_valid[None], s, NEG_INF)
    m = jnp.max(s, axis=-1, keepdims=True)
    p = jnp.exp(s - m)
    p = p * pl.reciprocal(jnp.sum(p, axis=-1, keepdims=True), approx=True)
    ctx = jnp.einsum('hqk,hkd->hqd', p.astype(MXU_DTYPE), vh,
                     preferred_element_type=jnp.float32)                  # (H, T, HEAD_DIM)
    attn = jnp.concatenate([ctx[h] for h in range(N_HEADS)], axis=-1)     # (T, D)
    attn = _mm(attn, wo[...]) + bo[...]
    x = x + attn

    # --- feed-forward block ----------------------------------------------------
    y = _ln(x, ff_ln_g[...], ff_ln_b[...], LN_EPS)
    # TODO(synk): PyTorch nn.GELU() is exact-erf; tanh approximation used here.
    y = jax.nn.gelu(_mm(y, w1[...]) + b1[...], approximate=True)
    y = _mm(y, w2[...]) + b2[...]
    x = x + y
    o_ref[0] = _ln(x, ln_out_g[...], ln_out_b[...], LN_EPS).astype(o_ref.dtype)


def encoder_layer(x, lengths, lp):
    B, T, D = x.shape
    params = [
        lp["ln_in_g"].reshape(1, D), lp["ln_in_b"].reshape(1, D),
        lp["wq"].astype(MXU_DTYPE), lp["bq"].reshape(1, D),
        lp["wkv"].astype(MXU_DTYPE), lp["bkv"].reshape(1, 2 * D),
        lp["wo"].astype(MXU_DTYPE), lp["bo"].reshape(1, D),
        lp["ff_ln_g"].reshape(1, D), lp["ff_ln_b"].reshape(1, D),
        lp["w1"].astype(MXU_DTYPE), lp["b1"].reshape(1, FFN_DIM),
        lp["w2"].astype(MXU_DTYPE), lp["b2"].reshape(1, D),
        lp["ln_out_g"].reshape(1, D), lp["ln_out_b"].reshape(1, D),
    ]

    def xmap(bb, lens):        # index_maps get the scalar-prefetch ref positionally
        return (bb, 0, 0)

    def pmap(bb, lens):        # weights: same block every grid step (no re-DMA)
        return (0, 0)

    # TODO(synk): at real T, add a query-tile grid axis (flash-style online softmax) so the
    # (T,T) scores and (T,FFN_DIM) GELU intermediates are not all live at once.
    return pl.pallas_call(
        _encoder_layer_kernel,
        out_shape=jax.ShapeDtypeStruct((B, T, D), jnp.bfloat16),
        grid_spec=pltpu.PrefetchScalarGridSpec(
            num_scalar_prefetch=1,
            grid=(B,),
            in_specs=[pl.BlockSpec((1, T, D), xmap)]
                     + [pl.BlockSpec(p.shape, pmap) for p in params],
            out_specs=pl.BlockSpec((1, T, D), xmap),
        ),
        compiler_params=pltpu.CompilerParams(
            dimension_semantics=("parallel",),
            vmem_limit_bytes=VMEM_LIMIT),
    )(lengths, x, *params)


# ---------------------------------------------------------------------------
# Layer-normalized LSTM (torchaudio _CustomLSTM, layer_norm=True, no x2g/p2g bias)
# grid=(B,) "parallel" (both TCs on v7x), time indexed in-kernel (no JAX transposes),
# input-to-gates projection hoisted, bounded-unroll recurrence.
# ---------------------------------------------------------------------------
def _lstm_kernel(x_ref, wx_ref, wh_ref, gng_ref, gnb_ref, cng_ref, cnb_ref,
                 o_ref, x2g_ref):
    U1, S = x_ref.shape
    H = SYM_DIM
    # Hoisted input-to-gates projection: one (U1, S) @ (S, 4H) MXU call per batch element.
    x2g_ref[...] = _mm(x_ref[...], wx_ref[...])
    wh = wh_ref[...]
    gng, gnb = gng_ref[...], gnb_ref[...]
    cng, cnb = cng_ref[...], cnb_ref[...]

    def step(u, carry):
        h, c = carry                                           # (1, H) each
        g = x2g_ref[pl.ds(u, 1), :] + _mm(h, wh)               # (1, 4H)
        g = _ln(g, gng, gnb, LSTM_LN_EPS)
        ig = jax.nn.sigmoid(g[:, 0 * H:1 * H])
        fg = jax.nn.sigmoid(g[:, 1 * H:2 * H])
        cg = jnp.tanh(g[:, 2 * H:3 * H])
        og = jax.nn.sigmoid(g[:, 3 * H:4 * H])
        c = fg * c + ig * cg
        c = _ln(c, cng, cnb, LSTM_LN_EPS)
        h = og * jnp.tanh(c)
        o_ref[pl.ds(u, 1), :] = h
        return (h, c)

    h0 = jnp.zeros((1, H), jnp.float32)
    c0 = jnp.zeros((1, H), jnp.float32)
    # Bounded unroll: keeps LLO scheduling visibility without exploding vreg live ranges.
    jax.lax.fori_loop(0, U1, step, (h0, c0), unroll=min(4, U1))


def lstm_layer(x, p):
    B, U1, S = x.shape
    return pl.pallas_call(
        _lstm_kernel,
        out_shape=jax.ShapeDtypeStruct((B, U1, SYM_DIM), jnp.float32),
        grid=(B,),
        in_specs=[
            pl.BlockSpec((None, U1, S), lambda bb: (bb, 0, 0)),
            pl.BlockSpec((S, 4 * SYM_DIM), lambda bb: (0, 0)),
            pl.BlockSpec((SYM_DIM, 4 * SYM_DIM), lambda bb: (0, 0)),
            pl.BlockSpec((1, 4 * SYM_DIM), lambda bb: (0, 0)),
            pl.BlockSpec((1, 4 * SYM_DIM), lambda bb: (0, 0)),
            pl.BlockSpec((1, SYM_DIM), lambda bb: (0, 0)),
            pl.BlockSpec((1, SYM_DIM), lambda bb: (0, 0)),
        ],
        out_specs=pl.BlockSpec((None, U1, SYM_DIM), lambda bb: (bb, 0, 0)),
        scratch_shapes=[pltpu.VMEM((U1, 4 * SYM_DIM), jnp.float32)],
        compiler_params=pltpu.CompilerParams(dimension_semantics=("parallel",)),
    )(x, p["wx"].astype(MXU_DTYPE), p["wh"].astype(MXU_DTYPE),
      p["gn_g"].reshape(1, -1), p["gn_b"].reshape(1, -1),
      p["cn_g"].reshape(1, -1), p["cn_b"].reshape(1, -1))


# ---------------------------------------------------------------------------
# RNNT joiner, gather-fused: relu(src+tgt) @ W + b, log-softmax over vocab, and
# the blank/target gathers done in-kernel.  Only blank_lp / emit_lp (B,T,U1,1)
# ever reach HBM (never the (B,T,U1,Vpad) log-prob tensor).
# grid=(B, T-tiles), both "parallel".
# ---------------------------------------------------------------------------
def _joiner_kernel(src_ref, tgt_ref, tid_ref, w_ref, b_ref, ob_ref, oe_ref):
    src = src_ref[0]                          # (tt, De) f32
    tgt = tgt_ref[0]                          # (U1, De) f32
    tid = tid_ref[0]                          # (U1, 1)  int32
    tt, De = src.shape
    U1 = tgt.shape[0]
    Vp = w_ref.shape[1]

    h = jnp.maximum(src[:, None, :] + tgt[None, :, :], 0.0)            # ReLU joiner (tt,U1,De)
    logits = _mm(h.reshape(tt * U1, De), w_ref[...]) + b_ref[...]      # (tt*U1, Vp)
    logits = logits.reshape(tt, U1, Vp)

    m = jnp.max(logits, axis=-1, keepdims=True)
    lse = jnp.log(jnp.sum(jnp.exp(logits - m), axis=-1, keepdims=True)) + m   # (tt,U1,1)

    tgt_onehot = (jax.lax.broadcasted_iota(jnp.int32, (U1, Vp), 1) == tid
                  ).astype(jnp.float32)                                 # (U1, Vp)
    blank_onehot = (jax.lax.broadcasted_iota(jnp.int32, (1, Vp), 1) == BLANK
                    ).astype(jnp.float32)                               # (1, Vp)

    ob_ref[0] = jnp.sum(logits * blank_onehot[None], axis=-1, keepdims=True) - lse
    oe_ref[0] = jnp.sum(logits * tgt_onehot[None], axis=-1, keepdims=True) - lse


def joiner_blank_emit(src_enc, tgt_enc, targets_u1, w, b):
    B, T, De = src_enc.shape
    U1 = tgt_enc.shape[1]
    V = w.shape[1]
    Vp = ((V + 127) // 128) * 128             # lane-dense vocab width (pad once)
    w_pad = jnp.zeros((De, Vp), MXU_DTYPE).at[:, :V].set(w.astype(MXU_DTYPE))
    b_pad = jnp.full((1, Vp), NEG_INF, jnp.float32).at[0, :V].set(b)   # pad logits ~ -1e9
    tid = targets_u1.astype(jnp.int32).reshape(B, U1, 1)

    tt = T if T <= 128 else 128               # T-tile so intermediates stay in VMEM
    nt = pl.cdiv(T, tt)
    # TODO(synk): at real sizes derive tt (and a U1 tile) from pltpu.get_tpu_info() VMEM.

    blank_lp, emit_lp = pl.pallas_call(
        _joiner_kernel,
        out_shape=(jax.ShapeDtypeStruct((B, T, U1, 1), jnp.float32),
                   jax.ShapeDtypeStruct((B, T, U1, 1), jnp.float32)),
        grid=(B, nt),
        in_specs=[
            pl.BlockSpec((1, tt, De), lambda bb, ti: (bb, ti, 0)),
            pl.BlockSpec((1, U1, De), lambda bb, ti: (bb, 0, 0)),
            pl.BlockSpec((1, U1, 1), lambda bb, ti: (bb, 0, 0)),
            pl.BlockSpec((De, Vp), lambda bb, ti: (0, 0)),
            pl.BlockSpec((1, Vp), lambda bb, ti: (0, 0)),
        ],
        out_specs=(pl.BlockSpec((1, tt, U1, 1), lambda bb, ti: (bb, ti, 0, 0)),
                   pl.BlockSpec((1, tt, U1, 1), lambda bb, ti: (bb, ti, 0, 0))),
        compiler_params=pltpu.CompilerParams(
            dimension_semantics=("parallel", "parallel"),
            vmem_limit_bytes=VMEM_LIMIT),
    )(src_enc, tgt_enc, tid, w_pad, b_pad)
    return blank_lp[..., 0], emit_lp[..., 0]                  # (B, T, U1) each


# ---------------------------------------------------------------------------
# RNNT alpha DP as an on-chip Pallas kernel: alpha row (B, U+1) stays resident,
# fori_loop over T; per-t the u-recursion is vectorized with an exclusive cumsum
# + prefix-logsumexp (Hillis-Steele lane shifts).  Output: per-batch -log p.
# ---------------------------------------------------------------------------
def _rnnt_alpha_kernel(blank_ref, emit_ref, tidx_ref, uidx_ref, out_ref):
    T, B, U1 = blank_ref.shape
    t_idx = tidx_ref[...]                                     # (B, 1) int32 (= logit_len - 1)
    u_idx = uidx_ref[...]                                     # (B, 1) int32 (= target_len)
    lane_u = jax.lax.broadcasted_iota(jnp.int32, (B, U1), 1)
    u_onehot = (lane_u == u_idx).astype(jnp.float32)          # (B, U1)

    def shift_right(x, s, fill):
        pad = jnp.full((B, s), fill, x.dtype)
        return jnp.concatenate([pad, x[:, :U1 - s]], axis=-1)

    def excl_cumsum(e):                                       # C[u] = sum_{j<u} e[j]
        y = shift_right(e, 1, 0.0)
        s = 1
        while s < U1:
            y = y + shift_right(y, s, 0.0)
            s *= 2
        return y

    def pfx_lse(z):                                           # inclusive prefix logsumexp
        s = 1
        while s < U1:
            z = _logaddexp(z, shift_right(z, s, NEG_INF))
            s *= 2
        return z

    def capture(alpha, blank_t):                              # alpha[t, u_idx] + blank[t, u_idx]
        return jnp.sum((alpha + blank_t) * u_onehot, axis=-1, keepdims=True)

    emit0 = emit_ref[0]
    blank0 = blank_ref[0]
    alpha = excl_cumsum(emit0)                                # alpha at t = 0
    captured = jnp.where(t_idx == 0, capture(alpha, blank0),
                         jnp.zeros((B, 1), jnp.float32))

    def step(t, carry):
        alpha, captured = carry
        base = alpha + blank_ref[t - 1]                       # stay-in-place path
        cume = excl_cumsum(emit_ref[t])
        # alpha_t[u] = logaddexp(base[u], alpha_t[u-1] + emit[t,u-1])  (vectorized over u)
        alpha = cume + pfx_lse(base - cume)
        captured = jnp.where(t_idx == t, capture(alpha, blank_ref[t]), captured)
        return alpha, captured

    alpha, captured = jax.lax.fori_loop(1, T, step, (alpha, captured))
    out_ref[...] = -captured


def rnnt_alpha_loss(blank_tb, emit_tb, logit_lengths, target_lengths):
    # TODO(synk): clamp=1.0 in torchaudio only affects gradients; the forward value is unchanged.
    T, B, U1 = blank_tb.shape
    t_idx = (jnp.asarray(logit_lengths, jnp.int32) - 1).reshape(-1, 1)
    u_idx = jnp.asarray(target_lengths, jnp.int32).reshape(-1, 1)
    return pl.pallas_call(
        _rnnt_alpha_kernel,
        out_shape=jax.ShapeDtypeStruct((B, 1), jnp.float32),
        in_specs=[VMEM_SPEC, VMEM_SPEC, VMEM_SPEC, VMEM_SPEC],
        out_specs=VMEM_SPEC,
    )(blank_tb, emit_tb, t_idx, u_idx)


# ---------------------------------------------------------------------------
# Model forward (glue around the kernels)
# ---------------------------------------------------------------------------
def encoder_forward(p, sources, source_lengths):
    # sources: (B, T, N_MELS) — transcriber of the RNNT model.
    B, T, _ = sources.shape
    num_frames = T - (T % STRIDE)                        # _TimeReduction
    T_red = num_frames // STRIDE
    lengths_red = jnp.asarray(source_lengths, jnp.int32) // STRIDE

    # input_linear + time reduction fused via a block-diagonal weight:
    # out[:, t', s*TR:(s+1)*TR] = sources[:, 4t'+s, :] @ in_w  (bit-exact with linear-then-reduce)
    w_bd = jnp.zeros((STRIDE * N_MELS, D_MODEL), jnp.float32)
    for s in range(STRIDE):
        w_bd = w_bd.at[s * N_MELS:(s + 1) * N_MELS,
                       s * TR_DIM:(s + 1) * TR_DIM].set(p["in_w"])
    src_red = sources[:, :num_frames, :].reshape(B, T_red, STRIDE * N_MELS)
    x = batched_linear(src_red, w_bd, out_dtype=jnp.bfloat16)   # (B, T_red, D_MODEL) bf16

    for lp in p["layers"]:
        # TODO(synk): Emformer's block-wise streaming attention (right-context hard copy,
        # left-context cap, memory bank) is simplified to full self-attention + in-kernel key
        # padding mask; query frames past the valid length are unmasked but ignored by the loss.
        x = encoder_layer(x, lengths_red, lp)
    x = x[:, : T_red - RC_RED, :]                        # Emformer strips right-context frames
    x = batched_linear_ln(x, p["out_w"], p["out_b"], p["ln_g"], p["ln_b"])
    return x, lengths_red                                # lengths returned unchanged


def predictor_forward(p, tokens):
    emb = p["emb"][tokens]                               # embedding gather (B, U1, SYM)
    h = batched_layernorm(emb, p["in_ln_g"], p["in_ln_b"])
    for lp in p["lstm"]:
        h = lstm_layer(h, lp)                            # dropout -> identity (eval)
    h = batched_linear_ln(h, p["lin_w"], p["lin_b"], p["out_ln_g"], p["out_ln_b"])
    return h                                             # (B, U1, ENC_DIM)


def kinspeak_emformer_rnnt_forward(params, log_mel_spectrograms, log_mel_spectrogram_lengths,
                                   target_syllabe_ids, target_syllabe_id_lengths):
    # Mirrors KinspeakEmformerRNNT.forward.
    sources = jnp.transpose(log_mel_spectrograms, (0, 2, 1))      # (B, T, n_mels)
    B = sources.shape[0]

    # targets.split(lengths) + pad_sequence(batch_first=True)
    U = max(target_syllabe_id_lengths)
    targets = jnp.zeros((B, U), jnp.int32)
    off = 0
    for bb, L in enumerate(target_syllabe_id_lengths):
        targets = targets.at[bb, :L].set(target_syllabe_ids[off:off + L].astype(jnp.int32))
        off += L
    prepended = jnp.concatenate(
        [jnp.full((B, 1), BLANK, jnp.int32), targets], axis=1)    # blank-prepended targets
    targets_u1 = jnp.concatenate(
        [targets, jnp.zeros((B, 1), jnp.int32)], axis=1)          # padded to U+1 for the joiner

    src_enc, src_lengths = encoder_forward(params["enc"], sources, log_mel_spectrogram_lengths)
    tgt_enc = predictor_forward(params["pred"], prepended)

    blank_lp, emit_lp = joiner_blank_emit(src_enc, tgt_enc, targets_u1,
                                          params["join"]["w"], params["join"]["b"])

    # Small transpose so the DP kernel can index time on the leading (untiled) axis.
    blank_tb = jnp.transpose(blank_lp, (1, 0, 2))                 # (T, B, U+1)
    emit_tb = jnp.transpose(emit_lp, (1, 0, 2))
    neg_ll = rnnt_alpha_loss(blank_tb, emit_tb,
                             src_lengths - 1,                     # src_lengths - 1 (as in module)
                             jnp.asarray(target_syllabe_id_lengths, jnp.int32))
    return jnp.mean(neg_ll)


# ---------------------------------------------------------------------------
# Deterministic parameter init (synthetic — shapes from emformer_rnnt_base)
# ---------------------------------------------------------------------------
def init_params(key):
    keys = iter(jax.random.split(key, 256))

    def w(shape, scale=0.05):
        return scale * jax.random.normal(next(keys), shape, dtype=jnp.float32)

    ones = lambda s: jnp.ones(s, jnp.float32)
    zeros = lambda s: jnp.zeros(s, jnp.float32)

    layers = []
    for _ in range(N_LAYERS):
        layers.append(dict(
            ln_in_g=ones((D_MODEL,)), ln_in_b=zeros((D_MODEL,)),
            wq=w((D_MODEL, D_MODEL)), bq=zeros((D_MODEL,)),
            wkv=w((D_MODEL, 2 * D_MODEL)), bkv=zeros((2 * D_MODEL,)),
            wo=w((D_MODEL, D_MODEL)), bo=zeros((D_MODEL,)),
            ff_ln_g=ones((D_MODEL,)), ff_ln_b=zeros((D_MODEL,)),
            w1=w((D_MODEL, FFN_DIM)), b1=zeros((FFN_DIM,)),
            w2=w((FFN_DIM, D_MODEL)), b2=zeros((D_MODEL,)),
            ln_out_g=ones((D_MODEL,)), ln_out_b=zeros((D_MODEL,)),
        ))
    enc = dict(
        in_w=w((N_MELS, TR_DIM)),
        layers=layers,
        out_w=w((D_MODEL, ENC_DIM)), out_b=zeros((ENC_DIM,)),
        ln_g=ones((ENC_DIM,)), ln_b=zeros((ENC_DIM,)),
    )
    lstms = []
    for _ in range(N_LSTM):
        lstms.append(dict(
            wx=w((SYM_DIM, 4 * SYM_DIM)), wh=w((SYM_DIM, 4 * SYM_DIM)),
            gn_g=ones((4 * SYM_DIM,)), gn_b=zeros((4 * SYM_DIM,)),
            cn_g=ones((SYM_DIM,)), cn_b=zeros((SYM_DIM,)),
        ))
    pred = dict(
        emb=w((VOCAB, SYM_DIM)),
        in_ln_g=ones((SYM_DIM,)), in_ln_b=zeros((SYM_DIM,)),
        lstm=lstms,
        lin_w=w((SYM_DIM, ENC_DIM)), lin_b=zeros((ENC_DIM,)),
        out_ln_g=ones((ENC_DIM,)), out_ln_b=zeros((ENC_DIM,)),
    )
    join = dict(w=w((ENC_DIM, VOCAB)), b=zeros((VOCAB,)))
    return dict(enc=enc, pred=pred, join=join)


if __name__ == "__main__":
    key = jax.random.PRNGKey(0)
    k_param, k_x, k_tgt = jax.random.split(key, 3)
    params = init_params(k_param)

    B, T_mel = 2, 16
    log_mel = jax.random.normal(k_x, (B, N_MELS, T_mel), dtype=jnp.float32)  # (B, n_mels, T)
    mel_lengths = [16, 12]
    tgt_lengths = [3, 2]
    flat_targets = jax.random.randint(k_tgt, (sum(tgt_lengths),), 1, VOCAB, dtype=jnp.int32)

    loss = kinspeak_emformer_rnnt_forward(params, log_mel, mel_lengths, flat_targets, tgt_lengths)
    loss = jax.block_until_ready(loss)
    assert bool(jnp.isfinite(loss))
    print("KERNEL_OK")
</pallas_src>

<mosaic_0001>
module attributes {stable_mosaic.version = 11 : i64} {
  func.func @_batched_linear_kernel(%arg0: i32, %arg1: memref<1x4x64xf32, #tpu.memory_space<vmem>>, %arg2: memref<64x128xbf16, #tpu.memory_space<vmem>>, %arg3: memref<1x128xf32, #tpu.memory_space<vmem>>, %arg4: memref<1x4x128xbf16, #tpu.memory_space<vmem>>) attributes {dimension_semantics = [#tpu.dimension_semantics<parallel>], iteration_bounds = array<i64: 2>, scalar_prefetch = 0 : i64, scratch_operands = 0 : i64, tpu.core_type = #tpu.core_type<tc>, window_params = [{transform_indices = @transform_0, window_bounds = array<i64: 1, 4, 64>}, {pipeline_mode = #tpu.pipeline_mode<synchronous>, transform_indices = @transform_1, window_bounds = array<i64: 64, 128>}, {pipeline_mode = #tpu.pipeline_mode<synchronous>, transform_indices = @transform_2, window_bounds = array<i64: 1, 128>}, {transform_indices = @transform_3, window_bounds = array<i64: 1, 4, 128>}]} {
    %c0 = arith.constant 0 : index
    %c0_0 = arith.constant 0 : index
    %c0_1 = arith.constant 0 : index
    %0 = vector.load %arg1[%c0, %c0_0, %c0_1] : memref<1x4x64xf32, #tpu.memory_space<vmem>>, vector<1x4x64xf32>
    %1 = vector.shape_cast %0 : vector<1x4x64xf32> to vector<4x64xf32>
    %c0_2 = arith.constant 0 : index
    %c0_3 = arith.constant 0 : index
    %2 = vector.load %arg2[%c0_2, %c0_3] : memref<64x128xbf16, #tpu.memory_space<vmem>>, vector<64x128xbf16>
    %3 = arith.truncf %1 : vector<4x64xf32> to vector<4x64xbf16>
    %cst = arith.constant dense<0.000000e+00> : vector<4x128xf32>
    %4 = tpu.matmul %3, %2, %cst {dimension_numbers = #tpu.dot_dimension_numbers<[1], [0], [0], [1], [0, 0, 1, 1], [], []>} : vector<4x64xbf16>, vector<64x128xbf16>, vector<4x128xf32> -> vector<4x128xf32>
    %c0_4 = arith.constant 0 : index
    %c0_5 = arith.constant 0 : index
    %5 = vector.load %arg3[%c0_4, %c0_5] : memref<1x128xf32, #tpu.memory_space<vmem>>, vector<1x128xf32>
    %6 = vector.broadcast %5 : vector<1x128xf32> to vector<4x128xf32>
    %7 = arith.addf %4, %6 : vector<4x128xf32>
    %8 = arith.truncf %7 : vector<4x128xf32> to vector<4x128xbf16>
    %c0_6 = arith.constant 0 : index
    %c0_7 = arith.constant 0 : index
    %c0_8 = arith.constant 0 : index
    %9 = vector.load %arg4[%c0_6, %c0_7, %c0_8] : memref<1x4x128xbf16, #tpu.memory_space<vmem>>, vector<1x4x128xbf16>
    %10 = vector.shape_cast %9 : vector<1x4x128xbf16> to vector<4x128xbf16>
    %11 = vector.shape_cast %8 : vector<4x128xbf16> to vector<1x4x128xbf16>
    tpu.vector_store %arg4[%c0_6, %c0_7, %c0_8], %11 {strides = array<i32>} : memref<1x4x128xbf16, #tpu.memory_space<vmem>>, vector<1x4x128xbf16>,
    return
  }
  func.func @transform_0(%arg0: i32) -> (i32, i32, i32) {
    %c0_i32 = arith.constant 0 : i32
    %c0_i32_0 = arith.constant 0 : i32
    %c0_i32_1 = arith.constant 0 : i32
    return %arg0, %c0_i32, %c0_i32_0 : i32, i32, i32
  }
  func.func @transform_1(%arg0: i32) -> (i32, i32) {
    %c0_i32 = arith.constant 0 : i32
    %c0_i32_0 = arith.constant 0 : i32
    %c0_i32_1 = arith.constant 0 : i32
    return %c0_i32, %c0_i32_0 : i32, i32
  }
  func.func @transform_2(%arg0: i32) -> (i32, i32) {
    %c0_i32 = arith.constant 0 : i32
    %c0_i32_0 = arith.constant 0 : i32
    %c0_i32_1 = arith.constant 0 : i32
    return %c0_i32, %c0_i32_0 : i32, i32
  }
  func.func @transform_3(%arg0: i32) -> (i32, i32, i32) {
    %c0_i32 = arith.constant 0 : i32
    %c0_i32_0 = arith.constant 0 : i32
    %c0_i32_1 = arith.constant 0 : i32
    return %arg0, %c0_i32, %c0_i32_0 : i32, i32, i32
  }
}

</mosaic_0001>

<bundles_post_ra>
// kernel: tpu_custom_call.1
= control target key start
LH: loop header
LB: loop body
LE: loop exit
PB: predicated region body
PF: predicated region fallthrough
CT: control target
= control target key end

     0   :  { %8 = vsyncpa [#allocation3], 0  ;;  %s842_s0 = inlined_call_operand.hbm [shape: f32[2,4,64], index: 0, kind: input, shape index: {}]   ;;  %s843_s1 = inlined_call_operand.hbm [shape: bf16[64,128], index: 1, kind: input, shape index: {}]   ;;  %s844_s2 = inlined_call_operand.vmem [shape: f32[1,128], index: 2, kind: input, shape index: {}]   ;;  %s845_s3 = inlined_call_operand.hbm [shape: bf16[2,4,128], index: 3, kind: output, shape index: {}]  }
   0x1   :  { %10 = vsyncpa [#allocation3 + $0x1], 0 }
   0x2   :  { %11 = vsyncpa [#allocation6], 0 }
   0x3   :  { %12 = vsyncpa [#allocation4], 0 }
   0x4   :  { %14 = vsyncpa [#allocation4 + $0x1], 0  ;;  %s642_s12 = smov 0   ;;  %s644_s13 = smov 0  }
   0x5   :  { %s646_s14 = smov 0   ;;  %s648_s15 = smov 0  }
   0x6 LB: > { %s663_s16 = sadd.s32 4294967295, %s613_s15   ;;  %s383_s17 = sadd.s32 4294967294, %s613_s15   ;;  %s613_s15 = sphi %s648_s15, %s865_s15   ;;  %s609_s14 = sphi %s646_s14, %s864_s14   ;;  %s605_s13 = sphi %s644_s13, %s863_s13   ;;  %s601_s12 = sphi %s642_s12, %s862_s12  }
   0x7   : > { %p40_p0 = scmp.ne.s32.totalorder %s605_s13, %s601_s12  ;;  %p846_p1 = scmp.eq.s32.totalorder %s663_s16, 0 }
   0x8   : > { %p112_p3 = scmp.eq.s32.totalorder %s383_s17, 1  ;;  %p384_p5 = scmp.ge.s32.totalorder %s613_s15, 1 }
   0x9   : > { %p672_p4 = por %p846_p1, %p40_p0  ;;  %p119_p7 = scmp.lt.s32.totalorder %s613_s15, 3 }
   0xa   : > { %p677_p6 = por %p112_p3, %p40_p0  ;;  %s615_s21 = smov [#allocation5]  }
   0xb   : > { %s849_s18 = scalar_select %p672_p4, 1, 0 }
   0xc   : > { %s850_s19 = scalar_select %p677_p6, 1, 0 }
   0xd   : > { %p682_p8 = pnand %p384_p5, %p119_p7  ;;  %s131_s22 = sshll.u32 %s615_s21, 4  ;;  %s686_s22 = int_to_ptr.vmem [resolvable:$true] %s131_s22 }
   0xe   : > { %s698_s24 = sadd.s32 1, %s613_s15   ;;  %s27_s25 = sadd.s32 1, %s609_s14 }
   0xf   : > { %s851_s20 = scalar_select %p682_p8, 1, 0 }
  0x10   : > { %p428_p9 = pneg %p682_p8  ;;  %s24_s26 = ssub.s32 %s613_s15, %s698_s24 }
  0x11   : > { %s485_s29 = scalar_lea.hbm %s843_s1, 512 }
  0x12   : > { %p693_p11 = pnand %p428_p9, %p846_p1  ;;  %p486_p12 = scmp.ne.s32.totalorder %s843_s1, %s485_s29 }
  0x13   : > { %p492_p5 = scmp.lt.u32.totalorder %s485_s29, %s843_s1 }
  0x14   : > { %p487_p13 = pneg %p693_p11 }
  0x16   : > { %p488_p0 = pnand %p487_p13, %p486_p12 }
  0x18   : > { %p489_p3 = pneg %p488_p0 }
  0x1a   : > { %p494_p7 = pnand %p492_p5, %p489_p3 }
  0x1c   : > { %497 = shalt.err (!%p494_p7)
}
  0x1d   : > { %s498_s7 = scalar_lea.vmem %s686_s22, 512  ;;  %p506_p2 = scmp.lt.s32.totalorder %s686_s22, %s686_s22 }
  0x1e   : > { %p499_p9 = scmp.ne.s32.totalorder %s686_s22, %s498_s7  ;;  %p507_p6 = scmp.lt.s32.totalorder %s498_s7, %s498_s7 }
  0x20   : > { %p501_p10 = pnand %p499_p9, %p487_p13  ;;  %p508_p4 = por %p507_p6, %p506_p2 }
  0x22   : > { %p502_p1 = pneg %p501_p10 }
  0x24   : > { %p509_p8 = pnand %p508_p4, %p502_p1 }
  0x26   : > { %512 = shalt.err (!%p509_p8)
}
  0x27   : > { %s616_s8 = smov 64   ;;  %s617_s9 = smov 4  }
  0x28   : > { %431 = dma.hbm_to_vmem [thread:$0]  (!%p693_p11), %s843_s1, 512, %s686_s22, [#allocation6], %s616_s8, %s616_s8, %s617_s9  }
  0x29   : > { %p25_p2 = scmp.eq.s32.totalorder %s24_s26, 0  ;;  %p34_p1 = scmp.ne.s32.totalorder %s609_s14, %s605_s13 }
  0x2a   : > { %p35_p4 = scmp.eq.s32.totalorder %s613_s15, 0  ;;  %p441_p6 = scmp.lt.s32.totalorder %s613_s15, 2 }
  0x2b   : > { %s729_s17 = scalar_select %p25_p2, %s609_s14, %s27_s25  }
  0x2c   : > { %p36_p8 = por %p35_p4, %p34_p1  ;;  %p853_p10 = scmp.eq.s32.totalorder %s663_s16, 1 }
  0x2d   : > { %s148_s27 = sand.u32 1, %s609_s14   ;;  %s388_s28 = sshll.u32 %s613_s15, 6 }
  0x2e   : > { %p733_p12 = por %p853_p10, %p34_p1  ;;  %s387_s29 = sshll.u32 %s148_s27, 2 }
  0x2f   : > { %s742_s4 = scalar_lea.hbm %s842_s0, %s388_s28  ;;  %s152_s22 = scalar_lea.vmem [#allocation2], %s387_s29 }
  0x30   : > { %s159_s25 = sshll.u32 %s152_s22, 4  ;;  %p744_p11 = pnand %p441_p6, %p36_p8  ;;  %s748_s25 = int_to_ptr.vmem [resolvable:$true] %s159_s25 }
  0x31   : > { %s149_s5 = scalar_lea.sflag [#allocation3], %s148_s27  ;;  %s513_s6 = scalar_lea.hbm %s742_s4, 64 }
  0x32   : > { %p514_p13 = scmp.ne.s32.totalorder %s742_s4, %s513_s6  ;;  %p515_p0 = pneg %p744_p11 }
  0x33   : > { %s518_s9 = scalar_lea.hbm %s842_s0, 128  ;;  %p519_p7 = scmp.lt.u32.totalorder %s742_s4, %s842_s0 }
  0x34   : > { %p516_p3 = pnand %p515_p0, %p514_p13  ;;  %p520_p9 = scmp.lt.u32.totalorder %s518_s9, %s513_s6 }
  0x35   : > { %p522_p1 = scmp.lt.u32.totalorder %s513_s6, %s742_s4 }
  0x36   : > { %p517_p5 = pneg %p516_p3  ;;  %p521_p2 = por %p520_p9, %p519_p7 }
  0x38   : > { %p523_p4 = por %p522_p1, %p521_p2 }
  0x3a   : > { %p524_p6 = pnand %p523_p4, %p517_p5 }
  0x3c   : > { %527 = shalt.err (!%p524_p6)
}
  0x3d   : > { %s528_s27 = scalar_lea.vmem %s748_s25, 64  ;;  %s618_s28 = smov [#allocation2]  }
  0x3e   : > { %p529_p8 = scmp.ne.s32.totalorder %s748_s25, %s528_s27  ;;  %s533_s29 = sshll.u32 %s618_s28, 4  ;;  %s534_s29 = int_to_ptr.vmem [resolvable:$false] %s533_s29 }
  0x3f   : > { %s535_s23 = scalar_lea.vmem %s534_s29, 128  ;;  %p536_p3 = scmp.lt.s32.totalorder %s748_s25, %s534_s29 }
  0x40   : > { %p531_p10 = pnand %p529_p8, %p515_p0  ;;  %p537_p7 = scmp.lt.s32.totalorder %s535_s23, %s528_s27 }
  0x42   : > { %p532_p13 = pneg %p531_p10  ;;  %p538_p9 = por %p537_p7, %p536_p3 }
  0x44   : > { %p539_p2 = pnand %p538_p9, %p532_p13 }
  0x46   : > { %542 = shalt.err (!%p539_p2)
}
  0x47   : > { %435 = dma.hbm_to_vmem [thread:$0]  (!%p744_p11), %s742_s4, 64, %s748_s25, %s149_s5  }
  0x48   : > { %p856_p5 = scmp.ne.s32.totalorder %s851_s20, 0 }
  0x49   : > { %s778_s30 = sand.u32 (!%p856_p5), 1, %s605_s13   ;;  %p857_p0 = scmp.ne.s32.totalorder (!%p856_p5), %s849_s18, 0 }
  0x4a   : > { %168 = sbr.rel (%p856_p5) target bundleno = 332 (0x14c), region = 32  ;;  %s390_s22 = sshll.u32 (!%p856_p5), %s778_s30, 2 }
  0x4b   : > { %s171_s6 = scalar_lea.sflag (!%p856_p5), [#allocation3], %s778_s30  ;;  %s174_s7 = scalar_lea.vmem (!%p856_p5), [#allocation2], %s390_s22 }
  0x51   : > { %588 = dma.done.wait (%p857_p0), %s171_s6, 64  }
  0x52   : > { %590 = vsyncadd (%p857_p0), %s171_s6, 4294967232  ;;  %p858_p1 = scmp.eq.s32.totalorder %s663_s16, 0 }
  0x54   : > { %592 = dma.done.wait (%p858_p1), [#allocation6], 512   ;;  %p859_p11 = pmov %p858_p1 }
  0x55   : > { %v619_v0 = vmov 0.0   ;;  %vm620_vm0 = vmmov 0   ;;  %v481_v1 = vld [vmem:[#allocation5] sm:$0xff]   ;;  %v482_v2 = vld [vmem:[#allocation5 + $0x8] sm:$0xff]   ;;  %v483_v3 = vld [vmem:[#allocation5 + $0x10] sm:$0xff]   ;;  %vm243_vm1 = vcmask 523264  }
  0x56   : > { %594 = vsyncadd (%p859_p11), [#allocation6], 4294966784  ;;  %408 = vmatprep.subr.bf16.mxu0 %v619_v0  ;;  %416 = vmatprep.mubr.msk.bf16.mxu0 %vm620_vm0, %v619_v0  ;;  %v484_v4 = vld [vmem:[#allocation5 + $0x18] sm:$0xff]   ;;  %s392_s18 = sshll.u32 %s778_s30, 1  ;;  %s400_s25 = sshll.u32 %s663_s16, 5 }
  0x57   : > { %409 = vmatpush3.bf16.msra.mxu0 %v481_v1  ;;  %v202_v5 = vld [vmem:[%s174_s7] sm:$0xf]  ;;  %s200_s26 = scalar_lea.vmem [#allocation7], %s392_s18  ;;  %s798_s10 = scalar_lea.hbm %s845_s3, %s400_s25 }
  0x58   : > { %410 = vmatprep.subr.bf16.mxu0 %v619_v0  ;;  %v211_v6 = vpack.c.bf16 %v202_v5, %v202_v5  ;;  %v393_v7 = vld [vmem:[%s844_s2] ss:$0 sm:$0xff]  ;;  %s303_s5 = sshll.u32 %s200_s26, 4  ;;  %s290_s11 = scalar_lea.sflag [#allocation4], %s778_s30  ;;  %s800_s5 = int_to_ptr.vmem [resolvable:$true] %s303_s5 }
  0x59   : > { %s543_s16 = scalar_lea.vmem %s800_s5, 32  ;;  %s621_s27 = smov [#allocation7]  }
  0x5a   : > { %p544_p4 = scmp.ne.s32.totalorder %s800_s5, %s543_s16  ;;  %s547_s28 = sshll.u32 %s621_s27, 4  ;;  %s548_s28 = int_to_ptr.vmem [resolvable:$false] %s547_s28 }
  0x5b   : > { %411 = vmatpush3.bf16.msra.mxu0 %v482_v2  ;;  %s549_s29 = scalar_lea.vmem %s548_s28, 64  ;;  %p550_p10 = scmp.lt.s32.totalorder %s800_s5, %s548_s28 }
  0x5c   : > { %412 = vmatprep.subr.bf16.mxu0 %v619_v0  ;;  %p545_p6 = pnand %p544_p4, %p733_p12  ;;  %p551_p13 = scmp.lt.s32.totalorder %s549_s29, %s543_s16 }
  0x5e   : > { %p546_p8 = pneg %p545_p6  ;;  %p552_p3 = por %p551_p13, %p550_p10 }
  0x5f   : > { %413 = vmatpush3.bf16.msra.mxu0 %v483_v3 }
  0x60   : > { %414 = vmatprep.subr.bf16.mxu0 %v619_v0  ;;  %p553_p7 = pnand %p552_p3, %p546_p8 }
  0x63   : > { %415 = vmatpush3.bf16.msra.mxu0 %v484_v4 }
  0x66   : > { %417 = vmatmul.mubr.msk.bf16.vlgmr.msra.gmra.mrb[0].mxu0 %vm243_vm1, %v211_v6 }
 0x139   : > { %v281_v8 = vpop.f32.mrb[0].mxu0 }
 0x13a   : > { %v282_v9 = vadd.f32 %v393_v7, %v281_v8  ;;  %v418_v10 = vpop.f32.mrb[1].mxu0 }
 0x13b   : > { %v284_v11 = vpop.f32.mrb[2].mxu0 }
 0x13c   : > { %v287_v12 = vpack.c.bf16 %v282_v9, %v282_v9  ;;  %v419_v13 = vpop.f32.mrb[3].mxu0 }
 0x13e   : > { %288 = vst [vmem:[%s200_s26] sm:$0x3] %v287_v12 }
 0x13f   : > { %556 = shalt.err (!%p553_p7)
}
 0x140   : > { %s557_s23 = scalar_lea.hbm %s798_s10, 32  ;;  %s561_s6 = scalar_lea.hbm %s845_s3, 64 }
 0x141   : > { %p558_p9 = scmp.ne.s32.totalorder %s798_s10, %s557_s23  ;;  %p562_p0 = scmp.lt.u32.totalorder %s798_s10, %s845_s3 }
 0x142   : > { %p563_p1 = scmp.lt.u32.totalorder %s561_s6, %s557_s23  ;;  %p565_p4 = scmp.lt.u32.totalorder %s557_s23, %s798_s10 }
 0x143   : > { %p559_p2 = pnand %p558_p9, %p733_p12 }
 0x144   : > { %p564_p11 = por %p563_p1, %p562_p0 }
 0x145   : > { %p560_p5 = pneg %p559_p2 }
 0x146   : > { %p566_p6 = por %p565_p4, %p564_p11 }
 0x148   : > { %p567_p8 = pnand %p566_p6, %p560_p5 }
 0x14a   : > { %570 = shalt.err (!%p567_p8)
}
 0x14b   : > { %426 = dma.vmem_to_hbm [thread:$0]  (%p733_p12), %s800_s5, 32, %s798_s10, %s290_s11  }
 0x14c PF: > { %s315_s20 = sand.u32 1, %s601_s12   ;;  %p860_p10 = scmp.ne.s32.totalorder %s850_s19, 0 }
 0x14d   : > { %p861_p13 = scmp.ge.s32.totalorder %s613_s15, 2  ;;  %s316_s4 = scalar_lea.sflag [#allocation4], %s315_s20 }
 0x14f   : > { %p437_p3 = pnand %p861_p13, %p860_p10 }
 0x151   : > { %596 = dma.done.wait (!%p437_p3), %s316_s4, 32  }
 0x152   : > { %598 = vsyncadd (!%p437_p3), %s316_s4, 4294967264  ;;  %p17_p7 = scmp.ge.s32.totalorder %s698_s24, 4   ;;  %s862_s12 = smov %s605_s13 }
 0x153   : > { %s863_s13 = smov %s609_s14  ;;  %s864_s14 = smov %s729_s17 }
 0x154   : > { %s865_s15 = smov %s698_s24  ;;  %19 = sbr.rel (!%p17_p7) target bundleno = 6 (0x6), region = 81 }
 0x15b   :  { %321 = vsyncpa [#allocation3], 1 }
 0x15c   :  { %323 = vsyncpa [#allocation3 + $0x1], 1 }
 0x15d   :  { %324 = vsyncpa [#allocation6], 1 }
 0x15e   :  { %325 = vsyncpa [#allocation4], 1 }
 0x15f   :  { %327 = vsyncpa [#allocation4 + $0x1], 1 }

</bundles_post_ra>
